<compile_context>
chip_gen: v7x
topology: tpu7x:2x2x1
jax: 0.10.0
libtpu: 0.0.40
codegen_flags: <defaults>
</compile_context>

<pallas_src>
import functools
import math

import jax
import jax.numpy as jnp
from jax.experimental import pallas as pl
from jax.experimental.pallas import tpu as pltpu


def _mha_kernel(q_ref, k_ref, v_ref, wbqkv_ref, wo_ref, misc_ref, out_ref,
                *, num_heads, head_dim):
    H, Dh = num_heads, head_dim
    B, S, Din = q_ref.shape
    HD = H * Dh
    BS = B * S

    # Flatten batch into rows (S = 8 = one sublane tile, so this is a layout no-op).
    q2 = q_ref[...].reshape(BS, Din)
    k2 = k_ref[...].reshape(BS, Din)
    v2 = v_ref[...].reshape(BS, Din)

    wbq = wbqkv_ref[...]                    # (3, Din+1, HD); row Din is the bias
    misc = misc_ref[...]                    # (3, Din): rows = [bo, ln_gamma, ln_beta]

    # ---- Q/K/V projections: 3 dense 2-D matmuls, 64-lane-dense weights ----------
    def project(x2, t):
        w = wbq[t, :Din, :]                 # (Din, HD)
        b = wbq[t, Din:, :]                 # (1, HD)
        return jnp.dot(x2, w, preferred_element_type=jnp.float32) + b   # (BS, HD)

    qp = project(q2, 0)                     # 1/sqrt(Dh) pre-folded into slot 0
    kp = project(k2, 1)
    vp = project(v2, 2)

    # ---- heads & batch onto one leading "group" axis (slices + leading stack) ---
    def to_groups(t2):                      # (B*S, H*Dh) -> (B*H, S, Dh); g = b*H + h
        tiles = [t2[b * S:(b + 1) * S, h * Dh:(h + 1) * Dh]
                 for b in range(B) for h in range(H)]
        return jnp.stack(tiles, axis=0)

    qg, kg, vg = to_groups(qp), to_groups(kp), to_groups(vp)      # (B*H, S, Dh)

    # ---- scaled dot-product attention, all (batch, head) groups at once ---------
    s = jnp.einsum("gqd,gkd->gqk", qg, kg,
                   preferred_element_type=jnp.float32)            # (B*H, S, S)
    s = s - jnp.max(s, axis=-1, keepdims=True)
    p = jnp.exp(s)
    attn = p / jnp.sum(p, axis=-1, keepdims=True)                 # exact divide (EUP idle)
    ctx = jnp.einsum("gqk,gkd->gqd", attn, vg,
                     preferred_element_type=jnp.float32)          # (B*H, S, Dh)

    # ---- merge heads back onto lanes, batches back onto rows --------------------
    ctx_rows = [jnp.concatenate([ctx[b * H + h] for h in range(H)], axis=-1)
                for b in range(B)]                                # B x (S, HD)
    ctx2 = jnp.concatenate(ctx_rows, axis=0)                      # (B*S, HD)

    # ---- single fused output projection (head reduction inside the MXU) ---------
    bo, ln_g, ln_b = misc[0:1], misc[1:2], misc[2:3]              # (1, Din) each
    proj = jnp.dot(ctx2, wo_ref[...],
                   preferred_element_type=jnp.float32) + bo       # (B*S, Din)

    # ---- residual + LayerNorm (eps = 1e-5, biased variance — matches PyTorch) ---
    resid = q2 + proj
    mean = jnp.mean(resid, axis=-1, keepdims=True)
    centered = resid - mean
    var = jnp.mean(centered * centered, axis=-1, keepdims=True)
    normed = centered * jax.lax.rsqrt(var + 1e-5)
    y = normed * ln_g + ln_b                                      # (B*S, Din)

    out_ref[...] = y.reshape(B, S, Din)


def multi_head_attention(q, k, v, packed, *, num_heads, out_dim):
    """q, k, v: (B, S, Din) float32. `packed` from pack_params. Returns (B, S, Din)."""
    B, S, Din = q.shape
    kernel = functools.partial(_mha_kernel, num_heads=num_heads, head_dim=out_dim)

    # Single gridless invocation: every operand is small, lives whole in VMEM.
    vmem = pl.BlockSpec(memory_space=pltpu.MemorySpace.VMEM)
    return pl.pallas_call(
        kernel,
        out_shape=jax.ShapeDtypeStruct((B, S, Din), jnp.float32),
        in_specs=[vmem] * 6,
        out_specs=vmem,
    )(q, k, v, packed["wbqkv"], packed["wo"], packed["misc"])


def init_params(key, in_dim, out_dim, num_heads):
    """Plain (PyTorch-equivalent) parameters: y = x @ W + b, W is (in, out)."""
    HD = num_heads * out_dim
    keys = jax.random.split(key, 8)
    scale_in = 1.0 / math.sqrt(in_dim)
    scale_hd = 1.0 / math.sqrt(HD)
    return {
        "wq": jax.random.uniform(keys[0], (in_dim, HD), jnp.float32, -scale_in, scale_in),
        "bq": jax.random.uniform(keys[1], (1, HD), jnp.float32, -scale_in, scale_in),
        "wk": jax.random.uniform(keys[2], (in_dim, HD), jnp.float32, -scale_in, scale_in),
        "bk": jax.random.uniform(keys[3], (1, HD), jnp.float32, -scale_in, scale_in),
        "wv": jax.random.uniform(keys[4], (in_dim, HD), jnp.float32, -scale_in, scale_in),
        "bv": jax.random.uniform(keys[5], (1, HD), jnp.float32, -scale_in, scale_in),
        "wo": jax.random.uniform(keys[6], (HD, in_dim), jnp.float32, -scale_hd, scale_hd),
        "bo": jax.random.uniform(keys[7], (1, in_dim), jnp.float32, -scale_hd, scale_hd),
        "ln_g": jnp.ones((1, in_dim), jnp.float32),
        "ln_b": jnp.zeros((1, in_dim), jnp.float32),
    }


def pack_params(params, *, num_heads, out_dim):
    """One-time packing into kernel-friendly layout.

    * wbqkv: (3, Din+1, H*Dh) — rows [0:Din] are W, row Din is the bias; the q slot
      (index 0) has 1/sqrt(d_k) folded into both W and b.
    * misc:  (3, Din) — rows [bo, ln_gamma, ln_beta].
    * wo:    (H*Dh, Din) — single fused output-projection weight.
    """
    Dh = out_dim
    scale = 1.0 / math.sqrt(Dh)

    def wb(w, b):                                   # (Din, HD), (1, HD) -> (Din+1, HD)
        return jnp.concatenate([w, b], axis=0)

    wbqkv = jnp.stack([wb(params["wq"] * scale, params["bq"] * scale),
                       wb(params["wk"], params["bk"]),
                       wb(params["wv"], params["bv"])], axis=0)   # (3, Din+1, HD)
    misc = jnp.concatenate([params["bo"], params["ln_g"], params["ln_b"]], axis=0)  # (3, Din)
    return {"wbqkv": wbqkv, "wo": params["wo"], "misc": misc}


def _reference(q, k, v, params, *, num_heads, out_dim):
    """Pure-JAX reference mirroring the PyTorch forward (mask=None)."""
    B, S, Din = q.shape
    Q = (q @ params["wq"] + params["bq"]).reshape(B, S, num_heads, out_dim).transpose(0, 2, 1, 3)
    K = (k @ params["wk"] + params["bk"]).reshape(B, S, num_heads, out_dim).transpose(0, 2, 1, 3)
    V = (v @ params["wv"] + params["bv"]).reshape(B, S, num_heads, out_dim).transpose(0, 2, 1, 3)
    scores = jnp.einsum("bhqd,bhkd->bhqk", Q, K) / math.sqrt(out_dim)
    attn = jax.nn.softmax(scores, axis=-1)
    out = jnp.einsum("bhqk,bhkd->bhqd", attn, V)
    out = out.transpose(0, 2, 1, 3).reshape(B, S, num_heads * out_dim)
    proj = out @ params["wo"] + params["bo"]
    resid = q + proj
    mean = resid.mean(-1, keepdims=True)
    var = ((resid - mean) ** 2).mean(-1, keepdims=True)
    return (resid - mean) / jnp.sqrt(var + 1e-5) * params["ln_g"] + params["ln_b"]


if __name__ == "__main__":
    batch, seq, in_dim, out_dim, num_heads = 2, 8, 32, 16, 4

    key = jax.random.PRNGKey(0)
    kq, kk, kv, kp = jax.random.split(key, 4)
    q = jax.random.normal(kq, (batch, seq, in_dim), jnp.float32)
    k = jax.random.normal(kk, (batch, seq, in_dim), jnp.float32)
    v = jax.random.normal(kv, (batch, seq, in_dim), jnp.float32)

    params = init_params(kp, in_dim, out_dim, num_heads)
    packed = pack_params(params, num_heads=num_heads, out_dim=out_dim)

    out = multi_head_attention(q, k, v, packed, num_heads=num_heads, out_dim=out_dim)
    out = jax.block_until_ready(out)

    ref = _reference(q, k, v, params, num_heads=num_heads, out_dim=out_dim)
    assert out.shape == (batch, seq, in_dim)
    # Exact softmax divide -> tight tolerance restored.
    assert jnp.allclose(out, ref, atol=1e-4, rtol=1e-4), "mismatch vs JAX reference"

    print("KERNEL_OK")
</pallas_src>

<mosaic_0001>
module attributes {stable_mosaic.version = 11 : i64} {
  func.func @_mha_kernel(%arg0: memref<2x8x32xf32, #tpu.memory_space<vmem>>, %arg1: memref<2x8x32xf32, #tpu.memory_space<vmem>>, %arg2: memref<2x8x32xf32, #tpu.memory_space<vmem>>, %arg3: memref<3x33x64xf32, #tpu.memory_space<vmem>>, %arg4: memref<64x32xf32, #tpu.memory_space<vmem>>, %arg5: memref<3x32xf32, #tpu.memory_space<vmem>>, %arg6: memref<2x8x32xf32, #tpu.memory_space<vmem>>) attributes {dimension_semantics = [], scalar_prefetch = 0 : i64, scratch_operands = 0 : i64, tpu.core_type = #tpu.core_type<tc>} {
    %c0 = arith.constant 0 : index
    %c0_0 = arith.constant 0 : index
    %c0_1 = arith.constant 0 : index
    %0 = vector.load %arg0[%c0, %c0_0, %c0_1] : memref<2x8x32xf32, #tpu.memory_space<vmem>>, vector<2x8x32xf32>
    %1 = vector.shape_cast %0 : vector<2x8x32xf32> to vector<16x32xf32>
    %c0_2 = arith.constant 0 : index
    %c0_3 = arith.constant 0 : index
    %c0_4 = arith.constant 0 : index
    %2 = vector.load %arg1[%c0_2, %c0_3, %c0_4] : memref<2x8x32xf32, #tpu.memory_space<vmem>>, vector<2x8x32xf32>
    %3 = vector.shape_cast %2 : vector<2x8x32xf32> to vector<16x32xf32>
    %c0_5 = arith.constant 0 : index
    %c0_6 = arith.constant 0 : index
    %c0_7 = arith.constant 0 : index
    %4 = vector.load %arg2[%c0_5, %c0_6, %c0_7] : memref<2x8x32xf32, #tpu.memory_space<vmem>>, vector<2x8x32xf32>
    %5 = vector.shape_cast %4 : vector<2x8x32xf32> to vector<16x32xf32>
    %c0_8 = arith.constant 0 : index
    %c0_9 = arith.constant 0 : index
    %c0_10 = arith.constant 0 : index
    %6 = vector.load %arg3[%c0_8, %c0_9, %c0_10] : memref<3x33x64xf32, #tpu.memory_space<vmem>>, vector<3x33x64xf32>
    %c0_11 = arith.constant 0 : index
    %c0_12 = arith.constant 0 : index
    %7 = vector.load %arg5[%c0_11, %c0_12] : memref<3x32xf32, #tpu.memory_space<vmem>>, vector<3x32xf32>
    %8 = vector.extract_strided_slice %6 {offsets = [0, 0, 0], sizes = [1, 32, 64], strides = [1, 1, 1]} : vector<3x33x64xf32> to vector<1x32x64xf32>
    %9 = vector.shape_cast %8 : vector<1x32x64xf32> to vector<32x64xf32>
    %10 = vector.extract_strided_slice %6 {offsets = [0, 32, 0], sizes = [1, 1, 64], strides = [1, 1, 1]} : vector<3x33x64xf32> to vector<1x1x64xf32>
    %11 = vector.shape_cast %10 : vector<1x1x64xf32> to vector<1x64xf32>
    %cst = arith.constant dense<0.000000e+00> : vector<16x64xf32>
    %12 = tpu.matmul %1, %9, %cst {dimension_numbers = #tpu.dot_dimension_numbers<[1], [0], [0], [1], [0, 0, 1, 1], [], []>} : vector<16x32xf32>, vector<32x64xf32>, vector<16x64xf32> -> vector<16x64xf32>
    %13 = vector.broadcast %11 : vector<1x64xf32> to vector<16x64xf32>
    %14 = arith.addf %12, %13 : vector<16x64xf32>
    %15 = vector.extract_strided_slice %6 {offsets = [1, 0, 0], sizes = [1, 32, 64], strides = [1, 1, 1]} : vector<3x33x64xf32> to vector<1x32x64xf32>
    %16 = vector.shape_cast %15 : vector<1x32x64xf32> to vector<32x64xf32>
    %17 = vector.extract_strided_slice %6 {offsets = [1, 32, 0], sizes = [1, 1, 64], strides = [1, 1, 1]} : vector<3x33x64xf32> to vector<1x1x64xf32>
    %18 = vector.shape_cast %17 : vector<1x1x64xf32> to vector<1x64xf32>
    %cst_13 = arith.constant dense<0.000000e+00> : vector<16x64xf32>
    %19 = tpu.matmul %3, %16, %cst_13 {dimension_numbers = #tpu.dot_dimension_numbers<[1], [0], [0], [1], [0, 0, 1, 1], [], []>} : vector<16x32xf32>, vector<32x64xf32>, vector<16x64xf32> -> vector<16x64xf32>
    %20 = vector.broadcast %18 : vector<1x64xf32> to vector<16x64xf32>
    %21 = arith.addf %19, %20 : vector<16x64xf32>
    %22 = vector.extract_strided_slice %6 {offsets = [2, 0, 0], sizes = [1, 32, 64], strides = [1, 1, 1]} : vector<3x33x64xf32> to vector<1x32x64xf32>
    %23 = vector.shape_cast %22 : vector<1x32x64xf32> to vector<32x64xf32>
    %24 = vector.extract_strided_slice %6 {offsets = [2, 32, 0], sizes = [1, 1, 64], strides = [1, 1, 1]} : vector<3x33x64xf32> to vector<1x1x64xf32>
    %25 = vector.shape_cast %24 : vector<1x1x64xf32> to vector<1x64xf32>
    %cst_14 = arith.constant dense<0.000000e+00> : vector<16x64xf32>
    %26 = tpu.matmul %5, %23, %cst_14 {dimension_numbers = #tpu.dot_dimension_numbers<[1], [0], [0], [1], [0, 0, 1, 1], [], []>} : vector<16x32xf32>, vector<32x64xf32>, vector<16x64xf32> -> vector<16x64xf32>
    %27 = vector.broadcast %25 : vector<1x64xf32> to vector<16x64xf32>
    %28 = arith.addf %26, %27 : vector<16x64xf32>
    %29 = vector.extract_strided_slice %14 {offsets = [0, 0], sizes = [8, 16], strides = [1, 1]} : vector<16x64xf32> to vector<8x16xf32>
    %30 = vector.extract_strided_slice %14 {offsets = [0, 16], sizes = [8, 16], strides = [1, 1]} : vector<16x64xf32> to vector<8x16xf32>
    %31 = vector.extract_strided_slice %14 {offsets = [0, 32], sizes = [8, 16], strides = [1, 1]} : vector<16x64xf32> to vector<8x16xf32>
    %32 = vector.extract_strided_slice %14 {offsets = [0, 48], sizes = [8, 16], strides = [1, 1]} : vector<16x64xf32> to vector<8x16xf32>
    %33 = vector.extract_strided_slice %14 {offsets = [8, 0], sizes = [8, 16], strides = [1, 1]} : vector<16x64xf32> to vector<8x16xf32>
    %34 = vector.extract_strided_slice %14 {offsets = [8, 16], sizes = [8, 16], strides = [1, 1]} : vector<16x64xf32> to vector<8x16xf32>
    %35 = vector.extract_strided_slice %14 {offsets = [8, 32], sizes = [8, 16], strides = [1, 1]} : vector<16x64xf32> to vector<8x16xf32>
    %36 = vector.extract_strided_slice %14 {offsets = [8, 48], sizes = [8, 16], strides = [1, 1]} : vector<16x64xf32> to vector<8x16xf32>
    %37 = vector.shape_cast %29 : vector<8x16xf32> to vector<1x8x16xf32>
    %38 = vector.shape_cast %30 : vector<8x16xf32> to vector<1x8x16xf32>
    %39 = vector.shape_cast %31 : vector<8x16xf32> to vector<1x8x16xf32>
    %40 = vector.shape_cast %32 : vector<8x16xf32> to vector<1x8x16xf32>
    %41 = vector.shape_cast %33 : vector<8x16xf32> to vector<1x8x16xf32>
    %42 = vector.shape_cast %34 : vector<8x16xf32> to vector<1x8x16xf32>
    %43 = vector.shape_cast %35 : vector<8x16xf32> to vector<1x8x16xf32>
    %44 = vector.shape_cast %36 : vector<8x16xf32> to vector<1x8x16xf32>
    %45 = tpu.concatenate %37, %38, %39, %40, %41, %42, %43, %44 in 0 : vector<1x8x16xf32>, vector<1x8x16xf32>, vector<1x8x16xf32>, vector<1x8x16xf32>, vector<1x8x16xf32>, vector<1x8x16xf32>, vector<1x8x16xf32>, vector<1x8x16xf32> -> vector<8x8x16xf32>
    %46 = vector.extract_strided_slice %21 {offsets = [0, 0], sizes = [8, 16], strides = [1, 1]} : vector<16x64xf32> to vector<8x16xf32>
    %47 = vector.extract_strided_slice %21 {offsets = [0, 16], sizes = [8, 16], strides = [1, 1]} : vector<16x64xf32> to vector<8x16xf32>
    %48 = vector.extract_strided_slice %21 {offsets = [0, 32], sizes = [8, 16], strides = [1, 1]} : vector<16x64xf32> to vector<8x16xf32>
    %49 = vector.extract_strided_slice %21 {offsets = [0, 48], sizes = [8, 16], strides = [1, 1]} : vector<16x64xf32> to vector<8x16xf32>
    %50 = vector.extract_strided_slice %21 {offsets = [8, 0], sizes = [8, 16], strides = [1, 1]} : vector<16x64xf32> to vector<8x16xf32>
    %51 = vector.extract_strided_slice %21 {offsets = [8, 16], sizes = [8, 16], strides = [1, 1]} : vector<16x64xf32> to vector<8x16xf32>
    %52 = vector.extract_strided_slice %21 {offsets = [8, 32], sizes = [8, 16], strides = [1, 1]} : vector<16x64xf32> to vector<8x16xf32>
    %53 = vector.extract_strided_slice %21 {offsets = [8, 48], sizes = [8, 16], strides = [1, 1]} : vector<16x64xf32> to vector<8x16xf32>
    %54 = vector.shape_cast %46 : vector<8x16xf32> to vector<1x8x16xf32>
    %55 = vector.shape_cast %47 : vector<8x16xf32> to vector<1x8x16xf32>
    %56 = vector.shape_cast %48 : vector<8x16xf32> to vector<1x8x16xf32>
    %57 = vector.shape_cast %49 : vector<8x16xf32> to vector<1x8x16xf32>
    %58 = vector.shape_cast %50 : vector<8x16xf32> to vector<1x8x16xf32>
    %59 = vector.shape_cast %51 : vector<8x16xf32> to vector<1x8x16xf32>
    %60 = vector.shape_cast %52 : vector<8x16xf32> to vector<1x8x16xf32>
    %61 = vector.shape_cast %53 : vector<8x16xf32> to vector<1x8x16xf32>
    %62 = tpu.concatenate %54, %55, %56, %57, %58, %59, %60, %61 in 0 : vector<1x8x16xf32>, vector<1x8x16xf32>, vector<1x8x16xf32>, vector<1x8x16xf32>, vector<1x8x16xf32>, vector<1x8x16xf32>, vector<1x8x16xf32>, vector<1x8x16xf32> -> vector<8x8x16xf32>
    %63 = vector.extract_strided_slice %28 {offsets = [0, 0], sizes = [8, 16], strides = [1, 1]} : vector<16x64xf32> to vector<8x16xf32>
    %64 = vector.extract_strided_slice %28 {offsets = [0, 16], sizes = [8, 16], strides = [1, 1]} : vector<16x64xf32> to vector<8x16xf32>
    %65 = vector.extract_strided_slice %28 {offsets = [0, 32], sizes = [8, 16], strides = [1, 1]} : vector<16x64xf32> to vector<8x16xf32>
    %66 = vector.extract_strided_slice %28 {offsets = [0, 48], sizes = [8, 16], strides = [1, 1]} : vector<16x64xf32> to vector<8x16xf32>
    %67 = vector.extract_strided_slice %28 {offsets = [8, 0], sizes = [8, 16], strides = [1, 1]} : vector<16x64xf32> to vector<8x16xf32>
    %68 = vector.extract_strided_slice %28 {offsets = [8, 16], sizes = [8, 16], strides = [1, 1]} : vector<16x64xf32> to vector<8x16xf32>
    %69 = vector.extract_strided_slice %28 {offsets = [8, 32], sizes = [8, 16], strides = [1, 1]} : vector<16x64xf32> to vector<8x16xf32>
    %70 = vector.extract_strided_slice %28 {offsets = [8, 48], sizes = [8, 16], strides = [1, 1]} : vector<16x64xf32> to vector<8x16xf32>
    %71 = vector.shape_cast %63 : vector<8x16xf32> to vector<1x8x16xf32>
    %72 = vector.shape_cast %64 : vector<8x16xf32> to vector<1x8x16xf32>
    %73 = vector.shape_cast %65 : vector<8x16xf32> to vector<1x8x16xf32>
    %74 = vector.shape_cast %66 : vector<8x16xf32> to vector<1x8x16xf32>
    %75 = vector.shape_cast %67 : vector<8x16xf32> to vector<1x8x16xf32>
    %76 = vector.shape_cast %68 : vector<8x16xf32> to vector<1x8x16xf32>
    %77 = vector.shape_cast %69 : vector<8x16xf32> to vector<1x8x16xf32>
    %78 = vector.shape_cast %70 : vector<8x16xf32> to vector<1x8x16xf32>
    %79 = tpu.concatenate %71, %72, %73, %74, %75, %76, %77, %78 in 0 : vector<1x8x16xf32>, vector<1x8x16xf32>, vector<1x8x16xf32>, vector<1x8x16xf32>, vector<1x8x16xf32>, vector<1x8x16xf32>, vector<1x8x16xf32>, vector<1x8x16xf32> -> vector<8x8x16xf32>
    "tpu.trace_start"() <{level = 10 : i32, message = "gqd,gkd->gqk"}> : () -> ()
    %cst_15 = arith.constant dense<0.000000e+00> : vector<8x8x8xf32>
    %80 = tpu.matmul %45, %62, %cst_15 {dimension_numbers = #tpu.dot_dimension_numbers<[2], [2], [1], [1], [0, 0, 0, 1, 1, 1], [0], [0]>} : vector<8x8x16xf32>, vector<8x8x16xf32>, vector<8x8x8xf32> -> vector<8x8x8xf32>
    "tpu.trace_stop"() : () -> ()
    %cst_16 = arith.constant dense<0xFF800000> : vector<8x8xf32>
    %81 = vector.multi_reduction <maximumf>, %80, %cst_16 [2] : vector<8x8x8xf32> to vector<8x8xf32>
    %82 = vector.shape_cast %81 : vector<8x8xf32> to vector<8x8x1xf32>
    %83 = vector.broadcast %82 : vector<8x8x1xf32> to vector<8x8x8xf32>
    %84 = arith.subf %80, %83 : vector<8x8x8xf32>
    %85 = math.exp %84 : vector<8x8x8xf32>
    %cst_17 = arith.constant dense<0.000000e+00> : vector<8x8xf32>
    %86 = vector.multi_reduction <add>, %85, %cst_17 [2] : vector<8x8x8xf32> to vector<8x8xf32>
    %87 = vector.shape_cast %86 : vector<8x8xf32> to vector<8x8x1xf32>
    %88 = vector.broadcast %87 : vector<8x8x1xf32> to vector<8x8x8xf32>
    %89 = arith.divf %85, %88 : vector<8x8x8xf32>
    "tpu.trace_start"() <{level = 10 : i32, message = "gqk,gkd->gqd"}> : () -> ()
    %cst_18 = arith.constant dense<0.000000e+00> : vector<8x8x16xf32>
    %90 = tpu.matmul %89, %79, %cst_18 {dimension_numbers = #tpu.dot_dimension_numbers<[2], [1], [1], [2], [0, 0, 0, 1, 1, 2], [0], [0]>} : vector<8x8x8xf32>, vector<8x8x16xf32>, vector<8x8x16xf32> -> vector<8x8x16xf32>
    "tpu.trace_stop"() : () -> ()
    %91 = vector.extract_strided_slice %90 {offsets = [0, 0, 0], sizes = [1, 8, 16], strides = [1, 1, 1]} : vector<8x8x16xf32> to vector<1x8x16xf32>
    %92 = vector.shape_cast %91 : vector<1x8x16xf32> to vector<8x16xf32>
    %93 = vector.extract_strided_slice %90 {offsets = [1, 0, 0], sizes = [1, 8, 16], strides = [1, 1, 1]} : vector<8x8x16xf32> to vector<1x8x16xf32>
    %94 = vector.shape_cast %93 : vector<1x8x16xf32> to vector<8x16xf32>
    %95 = vector.extract_strided_slice %90 {offsets = [2, 0, 0], sizes = [1, 8, 16], strides = [1, 1, 1]} : vector<8x8x16xf32> to vector<1x8x16xf32>
    %96 = vector.shape_cast %95 : vector<1x8x16xf32> to vector<8x16xf32>
    %97 = vector.extract_strided_slice %90 {offsets = [3, 0, 0], sizes = [1, 8, 16], strides = [1, 1, 1]} : vector<8x8x16xf32> to vector<1x8x16xf32>
    %98 = vector.shape_cast %97 : vector<1x8x16xf32> to vector<8x16xf32>
    %99 = tpu.concatenate %92, %94, %96, %98 in 1 : vector<8x16xf32>, vector<8x16xf32>, vector<8x16xf32>, vector<8x16xf32> -> vector<8x64xf32>
    %100 = vector.extract_strided_slice %90 {offsets = [4, 0, 0], sizes = [1, 8, 16], strides = [1, 1, 1]} : vector<8x8x16xf32> to vector<1x8x16xf32>
    %101 = vector.shape_cast %100 : vector<1x8x16xf32> to vector<8x16xf32>
    %102 = vector.extract_strided_slice %90 {offsets = [5, 0, 0], sizes = [1, 8, 16], strides = [1, 1, 1]} : vector<8x8x16xf32> to vector<1x8x16xf32>
    %103 = vector.shape_cast %102 : vector<1x8x16xf32> to vector<8x16xf32>
    %104 = vector.extract_strided_slice %90 {offsets = [6, 0, 0], sizes = [1, 8, 16], strides = [1, 1, 1]} : vector<8x8x16xf32> to vector<1x8x16xf32>
    %105 = vector.shape_cast %104 : vector<1x8x16xf32> to vector<8x16xf32>
    %106 = vector.extract_strided_slice %90 {offsets = [7, 0, 0], sizes = [1, 8, 16], strides = [1, 1, 1]} : vector<8x8x16xf32> to vector<1x8x16xf32>
    %107 = vector.shape_cast %106 : vector<1x8x16xf32> to vector<8x16xf32>
    %108 = tpu.concatenate %101, %103, %105, %107 in 1 : vector<8x16xf32>, vector<8x16xf32>, vector<8x16xf32>, vector<8x16xf32> -> vector<8x64xf32>
    %109 = tpu.concatenate %99, %108 in 0 : vector<8x64xf32>, vector<8x64xf32> -> vector<16x64xf32>
    %110 = vector.extract_strided_slice %7 {offsets = [0, 0], sizes = [1, 32], strides = [1, 1]} : vector<3x32xf32> to vector<1x32xf32>
    %111 = vector.extract_strided_slice %7 {offsets = [1, 0], sizes = [1, 32], strides = [1, 1]} : vector<3x32xf32> to vector<1x32xf32>
    %112 = vector.extract_strided_slice %7 {offsets = [2, 0], sizes = [1, 32], strides = [1, 1]} : vector<3x32xf32> to vector<1x32xf32>
    %c0_19 = arith.constant 0 : index
    %c0_20 = arith.constant 0 : index
    %113 = vector.load %arg4[%c0_19, %c0_20] : memref<64x32xf32, #tpu.memory_space<vmem>>, vector<64x32xf32>
    %cst_21 = arith.constant dense<0.000000e+00> : vector<16x32xf32>
    %114 = tpu.matmul %109, %113, %cst_21 {dimension_numbers = #tpu.dot_dimension_numbers<[1], [0], [0], [1], [0, 0, 1, 1], [], []>} : vector<16x64xf32>, vector<64x32xf32>, vector<16x32xf32> -> vector<16x32xf32>
    %115 = vector.broadcast %110 : vector<1x32xf32> to vector<16x32xf32>
    %116 = arith.addf %114, %115 : vector<16x32xf32>
    %117 = arith.addf %1, %116 : vector<16x32xf32>
    %cst_22 = arith.constant dense<0.000000e+00> : vector<16xf32>
    %118 = vector.multi_reduction <add>, %117, %cst_22 [1] : vector<16x32xf32> to vector<16xf32>
    %119 = vector.shape_cast %118 : vector<16xf32> to vector<16x1xf32>
    %cst_23 = arith.constant 3.200000e+01 : f32
    %120 = vector.broadcast %cst_23 : f32 to vector<16x1xf32>
    %121 = arith.divf %119, %120 : vector<16x1xf32>
    %122 = vector.broadcast %121 : vector<16x1xf32> to vector<16x32xf32>
    %123 = arith.subf %117, %122 : vector<16x32xf32>
    %124 = arith.mulf %123, %123 : vector<16x32xf32>
    %cst_24 = arith.constant dense<0.000000e+00> : vector<16xf32>
    %125 = vector.multi_reduction <add>, %124, %cst_24 [1] : vector<16x32xf32> to vector<16xf32>
    %126 = vector.shape_cast %125 : vector<16xf32> to vector<16x1xf32>
    %cst_25 = arith.constant 3.200000e+01 : f32
    %127 = vector.broadcast %cst_25 : f32 to vector<16x1xf32>
    %128 = arith.divf %126, %127 : vector<16x1xf32>
    %cst_26 = arith.constant 9.99999974E-6 : f32
    %129 = vector.broadcast %cst_26 : f32 to vector<16x1xf32>
    %130 = arith.addf %128, %129 : vector<16x1xf32>
    %131 = math.rsqrt %130 : vector<16x1xf32>
    %132 = vector.broadcast %131 : vector<16x1xf32> to vector<16x32xf32>
    %133 = arith.mulf %123, %132 : vector<16x32xf32>
    %134 = vector.broadcast %111 : vector<1x32xf32> to vector<16x32xf32>
    %135 = arith.mulf %133, %134 : vector<16x32xf32>
    %136 = vector.broadcast %112 : vector<1x32xf32> to vector<16x32xf32>
    %137 = arith.addf %135, %136 : vector<16x32xf32>
    %138 = vector.shape_cast %137 : vector<16x32xf32> to vector<2x8x32xf32>
    %c0_27 = arith.constant 0 : index
    %c0_28 = arith.constant 0 : index
    %c0_29 = arith.constant 0 : index
    %139 = vector.load %arg6[%c0_27, %c0_28, %c0_29] : memref<2x8x32xf32, #tpu.memory_space<vmem>>, vector<2x8x32xf32>
    tpu.vector_store %arg6[%c0_27, %c0_28, %c0_29], %138 {strides = array<i32>} : memref<2x8x32xf32, #tpu.memory_space<vmem>>, vector<2x8x32xf32>,
    return
  }
}

</mosaic_0001>

<bundles_post_ra>
// kernel: tpu_custom_call.1
= control target key start
LH: loop header
LB: loop body
LE: loop exit
PB: predicated region body
PF: predicated region fallthrough
CT: control target
= control target key end

     0   :  { %11 = vsyncpa [#allocation3], 0  ;;  %s2444_s0 = inlined_call_operand.vmem [shape: f32[2,8,32], index: 0, kind: input, shape index: {}]   ;;  %s2445_s1 = inlined_call_operand.vmem [shape: f32[2,8,32], index: 1, kind: input, shape index: {}]   ;;  %s2446_s2 = inlined_call_operand.vmem [shape: f32[2,8,32], index: 2, kind: input, shape index: {}]   ;;  %s2447_s3 = inlined_call_operand.hbm [shape: f32[3,33,64], index: 3, kind: input, shape index: {}]   ;;  %s2448_s4 = inlined_call_operand.vmem [shape: f32[64,32], index: 4, kind: input, shape index: {}]   ;;  %s2449_s5 = inlined_call_operand.vmem [shape: f32[3,32], index: 5, kind: input, shape index: {}]   ;;  %s2450_s6 = inlined_call_operand.hbm [shape: f32[2,8,32], index: 6, kind: output, shape index: {}]  }
   0x1   :  { %12 = vsyncpa [#allocation4], 0  ;;  %s2178_s21 = smov [#allocation2]   ;;  %s2130_s25 = scalar_lea.hbm %s2447_s3, 1920 }
   0x2   :  { %s24_s22 = sshll.u32 %s2178_s21, 4  ;;  %p2131_p0 = scmp.ne.s32.totalorder %s2447_s3, %s2130_s25  ;;  %s25_s22 = int_to_ptr.vmem [resolvable:$true] %s24_s22 }
   0x3   :  { %p2134_p1 = scmp.lt.u32.totalorder %s2130_s25, %s2447_s3 }
   0x5   :  { %p2136_p2 = pnand %p2134_p1, %p2131_p0 }
   0x7   :  { %2139 = shalt.err (!%p2136_p2)
}
   0x8   :  { %s2140_s30 = scalar_lea.vmem %s25_s22, 1920  ;;  %p2145_p4 = scmp.lt.s32.totalorder %s25_s22, %s25_s22 }
   0x9   :  { %p2141_p3 = scmp.ne.s32.totalorder %s25_s22, %s2140_s30  ;;  %p2146_p5 = scmp.lt.s32.totalorder %s2140_s30, %s2140_s30 }
   0xb   :  { %p2147_p6 = por %p2146_p5, %p2145_p4 }
   0xd   :  { %p2148_p7 = pnand %p2147_p6, %p2141_p3 }
   0xf   :  { %2151 = shalt.err (!%p2148_p7)
}
  0x10   :  { %s2179_s7 = smov 128   ;;  %s2180_s8 = smov 8  }
  0x11   :  { %30 = dma.hbm_to_vmem [thread:$0]  %s2447_s3, 1920, %s25_s22, [#allocation3], %s2179_s7, %s2179_s7, %s2180_s8  }
  0x12   :  { %2174 = dma.done.wait [#allocation3], 1920  }
  0x13   :  { %2175 = vsyncadd [#allocation3], 4294965376  ;;  %vm64_vm0 = vcmask 261120   ;;  %v44_v0 = vld [vmem:[#allocation2] sm:$0xff]  ;;  %v45_v1 = vld [vmem:[#allocation2 + $0x8] sm:$0xff]  ;;  %v2181_v16 = vmov 0.0  }
  0x14   :  { %v46_v2 = vld [vmem:[#allocation2 + $0x10] sm:$0xff]  ;;  %v2042_v3 = vpack.c.bf16 %v45_v1, %v44_v0  ;;  %v47_v4 = vld [vmem:[#allocation2 + $0x18] sm:$0xff]  ;;  %v2243_v5 = vld [vmem:[%s2444_s0] sm:$0xff]  ;;  %vm2182_vm1 = vmmov 0   ;;  %s2183_s20 = smov 80   ;;  %s2184_s21 = smov 112  }
  0x15   :  { %v2046_v6 = vpack.c.bf16 %v47_v4, %v46_v2  ;;  %1918 = vmatprep.mubr.msk.f32.mxu1 %vm64_vm0, %v2243_v5  ;;  %v49_v7 = vld [vmem:[#allocation2 + $0x28] sm:$0xff]  ;;  %v50_v8 = vld [vmem:[#allocation2 + $0x30] sm:$0xff]  ;;  %v51_v10 = vld [vmem:[#allocation2 + $0x38] sm:$0xff]  ;;  %vm364_vm2 = vcmask 130048   ;;  %vm957_vm3 = vcmask 64512   ;;  %s2186_s15 = smov 16  }
  0x16   :  { %2043 = vmatprep.subr.bf16.mxu1 %v2042_v3  ;;  %v2050_v9 = vpack.c.bf16 %v50_v8, %v49_v7  ;;  %v52_v11 = vld [vmem:[#allocation2 + $0x40] sm:$0xff]  ;;  %v2250_v12 = vld [vmem:[%s2444_s0 + $0x8] sm:$0xff]  ;;  %v54_v17 = vld [vmem:[#allocation2 + $0x50] sm:$0xff]  ;;  %s2187_s16 = smov 32   ;;  %s2188_s17 = smov 48   ;;  %vm1644_vm4 = vcmask 392192  }
  0x17   :  { %2045 = vmatpush3.bf16.msra.mxu1 %v2042_v3  ;;  %v2054_v13 = vpack.c.bf16 %v52_v11, %v51_v10  ;;  %v40_v14 = vld [vmem:[%s2445_s1] sm:$0xff]  ;;  %v41_v15 = vld [vmem:[%s2445_s1 + $0x8] sm:$0xff]  ;;  %v55_v18 = vld [vmem:[#allocation2 + $0x58] sm:$0xff]  ;;  %vm1673_vm5 = vcmask 523264  }
  0x18   :  { %2047 = vmatprep.subr.bf16.mxu1 %v2046_v6  ;;  %v56_v19 = vld [vmem:[#allocation2 + $0x60] sm:$0xff]  ;;  %v2058_v20 = vpack.c.bf16 %v55_v18, %v54_v17  ;;  %v57_v21 = vld [vmem:[#allocation2 + $0x68] sm:$0xff]  ;;  %v1821_v47 = vld [vmem:[#allocation2 + $0x70] ss:$0 sm:$0xff] }
  0x19   :  { %v2062_v22 = vpack.c.bf16 %v57_v21, %v56_v19  ;;  %v42_v23 = vld [vmem:[%s2446_s2] sm:$0xff]  ;;  %v43_v24 = vld [vmem:[%s2446_s2 + $0x8] sm:$0xff]  ;;  %s2185_s2 = smov 96  }
  0x1a   :  { %2059 = vmatprep.subr.bf16.mxu0 %v2058_v20  ;;  %1940 = vmatprep.mubr.msk.f32.mxu0 %vm64_vm0, %v42_v23  ;;  %v1815_v25 = vld [vmem:[#allocation2 + $0x20] ss:$0 sm:$0xff]  ;;  %v1818_v29 = vld [vmem:[#allocation2 + $0x48] ss:$0 sm:$0xff] }
  0x1b   :  { %2049 = vmatpush3.bf16.msra.mxu1 %v2046_v6  ;;  %2061 = vmatpush3.bf16.msra.mxu0 %v2058_v20 }
  0x1c   :  { %2051 = vmatprep.subr.bf16.mxu1 %v2050_v9  ;;  %2063 = vmatprep.subr.bf16.mxu0 %v2062_v22 }
  0x1e   :  { %1919 = vmatmul.mubr.msk.f32.vlgmr.msra.gmra.mrb[0].mxu1 %vm64_vm0, %v2250_v12 }
  0x1f   :  { %2053 = vmatpush3.bf16.msra.mxu1 %v2050_v9  ;;  %1929 = vmatprep.mubr.msk.f32.mxu1 %vm64_vm0, %v40_v14 }
  0x20   :  { %2055 = vmatprep.subr.bf16.mxu1 %v2054_v13  ;;  %2065 = vmatpush3.bf16.msra.mxu0 %v2062_v22 }
  0x21   :  { %1953 = vmatprep.subr.mxu0 %v2181_v16 }
  0x23   :  { %2057 = vmatpush3.bf16.msra.mxu1 %v2054_v13  ;;  %1941 = vmatmul.mubr.msk.f32.vlgmr.msra.gmra.mrb[0].mxu0 %vm64_vm0, %v43_v24 }
  0x24   :  { %1943 = vmatprep.subr.mxu1 %v2181_v16  ;;  %1955 = vmatprep.mubr.msk.f32.mxu0 %vm2182_vm1, %v2181_v16 }
  0x26   :  { %1930 = vmatmul.mubr.msk.f32.vlgmr.msra.gmra.mrb[2].mxu1 %vm64_vm0, %v41_v15 }
  0x27   :  { %1945 = vmatprep.mubr.msk.f32.mxu1 %vm2182_vm1, %v2181_v16 }
  0xf1   :  { %v1920_v26 = vpop.f32.mrb[0].mxu1 }
  0xf2   :  { %v137_v27 = vpop.f32.mrb[1].mxu1  ;;  %v143_v33 = vadd.f32 %v1920_v26, %v1815_v25 }
  0xf3   :  { %v138_v28 = vadd.f32 %v1815_v25, %v137_v27 }
  0xf5   :  { %321 = vrot.lane.b32.xlu1 %v138_v28, %s2183_s20  ;;  %317 = vrot.lane.b32.xlu0 %v138_v28, %s2184_s21 }
  0xf6   :  { %v1942_v48 = vpop.f32.mrb[0].mxu0 }
  0xf7   :  { %v2328_v49 = vadd.f32 %v1942_v48, %v1821_v47  ;;  %v307_v50 = vpop.f32.mrb[1].mxu0 }
  0xf8   :  { %v308_v51 = vadd.f32 %v1821_v47, %v307_v50 }
  0xf9   :  { %v1931_v30 = vpop.f32.mrb[2].mxu1 }
  0xfa   :  { %v222_v31 = vpop.f32.mrb[3].mxu1  ;;  %v228_v34 = vadd.f32 %v1931_v30, %v1818_v29 }
  0xfb   :  { %v223_v32 = vadd.f32 %v1818_v29, %v222_v31 }
  0xfd   :  { %1944 = vmatpush3.xpose.msk.msra.mxu1 %vm364_vm2, %v223_v32  ;;  %333 = vrot.lane.b32.xlu1 %v223_v32, %s2185_s2 }
  0xfe   :  { %331 = vrot.lane.b32.xlu0 %v223_v32, %s2184_s21  ;;  %1948 = vmatprep.subr.mxu1 %v2181_v16 }
 0x100   :  { %1946 = vmatmul.mubr.msk.f32.vlgmr.msra.gmra.mrb[4].mxu1 %vm364_vm2, %v138_v28 }
 0x101   :  { %335 = vrot.lane.b32.xlu1 %v223_v32, %s2183_s20  ;;  %1950 = vmatprep.mubr.msk.f32.mxu1 %vm2182_vm1, %v2181_v16 }
 0x102   :  { %319 = vrot.lane.b32.xlu0 %v138_v28, %s2185_s2 }
 0x105   :  { %324 = vrot.lane.b32.xlu1 %v143_v33, %s2184_s21 }
 0x106   :  { %338 = vrot.lane.b32.xlu0 %v228_v34, %s2184_s21 }
 0x109   :  { %342 = vrot.lane.b32.xlu1 %v228_v34, %s2183_s20 }
 0x10a   :  { %340 = vrot.lane.b32.xlu0 %v228_v34, %s2185_s2 }
 0x10d   :  { %328 = vrot.lane.b32.xlu1 %v143_v33, %s2183_s20 }
 0x10e   :  { %326 = vrot.lane.b32.xlu0 %v143_v33, %s2185_s2 }
 0x167   :  { %v322_v35 = vpop.permute.xlu1 %321  ;;  %v318_v36 = vpop.permute.xlu0 %317 }
 0x16f   :  { %v334_v37 = vpop.permute.xlu1 %333 }
 0x170   :  { %v332_v38 = vpop.permute.xlu0 %331  ;;  %1954 = vmatpush3.xpose.msk.msra.mxu0 %vm364_vm2, %v334_v37 }
 0x171   :  { %1949 = vmatpush3.xpose.msk.msra.mxu1 %vm364_vm2, %v332_v38  ;;  %1963 = vmatprep.subr.mxu0 %v2181_v16 }
 0x172   :  { %1958 = vmatprep.subr.mxu1 %v2181_v16 }
 0x173   :  { %v336_v39 = vpop.permute.xlu1 %335 }
 0x174   :  { %v320_v40 = vpop.permute.xlu0 %319  ;;  %1951 = vmatmul.mubr.msk.f32.vlgmr.msra.gmra.mrb[6].mxu1 %vm364_vm2, %v318_v36 }
 0x175   :  { %1956 = vmatmul.mubr.msk.f32.vlgmr.msra.gmra.mrb[2].mxu0 %vm364_vm2, %v320_v40  ;;  %1959 = vmatpush3.xpose.msk.msra.mxu1 %vm364_vm2, %v336_v39 }
 0x176   :  { %1964 = vmatpush3.xpose.msk.msra.mxu0 %vm364_vm2, %v228_v34  ;;  %1960 = vmatprep.mubr.msk.f32.mxu1 %vm2182_vm1, %v2181_v16 }
 0x177   :  { %v325_v41 = vpop.permute.xlu1 %324  ;;  %1965 = vmatprep.mubr.msk.f32.mxu0 %vm2182_vm1, %v2181_v16  ;;  %1968 = vmatprep.subr.mxu1 %v2181_v16 }
 0x178   :  { %v339_v42 = vpop.permute.xlu0 %338  ;;  %1961 = vmatmul.mubr.msk.f32.vlgmr.msra.gmra.mrb[8].mxu1 %vm364_vm2, %v322_v35  ;;  %1973 = vmatprep.subr.mxu0 %v2181_v16 }
 0x179   :  { %1966 = vmatmul.mubr.msk.f32.vlgmr.msra.gmra.mrb[4].mxu0 %vm364_vm2, %v143_v33  ;;  %1969 = vmatpush3.xpose.msk.msra.mxu1 %vm364_vm2, %v339_v42 }
 0x17a   :  { %1970 = vmatprep.mubr.msk.f32.mxu1 %vm2182_vm1, %v2181_v16  ;;  %1978 = vmatprep.subr.mxu1 %v2181_v16 }
 0x17b   :  { %v343_v43 = vpop.permute.xlu1 %342  ;;  %1975 = vmatprep.mubr.msk.f32.mxu0 %vm2182_vm1, %v2181_v16 }
 0x17c   :  { %v341_v44 = vpop.permute.xlu0 %340  ;;  %1971 = vmatmul.mubr.msk.f32.vlgmr.msra.gmra.mrb[10].mxu1 %vm364_vm2, %v325_v41 }
 0x17d   :  { %1974 = vmatpush3.xpose.msk.msra.mxu0 %vm364_vm2, %v341_v44  ;;  %1979 = vmatpush3.xpose.msk.msra.mxu1 %vm364_vm2, %v343_v43 }
 0x17e   :  { %1980 = vmatprep.mubr.msk.f32.mxu1 %vm2182_vm1, %v2181_v16  ;;  %1983 = vmatprep.subr.mxu0 %v2181_v16 }
 0x17f   :  { %v329_v45 = vpop.permute.xlu1 %328  ;;  %1988 = vmatprep.subr.mxu1 %v2181_v16 }
 0x180   :  { %v327_v46 = vpop.permute.xlu0 %326  ;;  %1981 = vmatmul.mubr.msk.f32.vlgmr.msra.gmra.mrb[12].mxu1 %vm364_vm2, %v329_v45 }
 0x181   :  { %1976 = vmatmul.mubr.msk.f32.vlgmr.msra.gmra.mrb[6].mxu0 %vm364_vm2, %v327_v46  ;;  %1990 = vmatprep.mubr.msk.f32.mxu1 %vm2182_vm1, %v2181_v16 }
 0x182   :  { %1985 = vmatprep.mubr.msk.f32.mxu0 %vm2182_vm1, %v2181_v16  ;;  %1984 = vmatpush3.msra.mxu0 %v308_v51 }
 0x183   :  { %1993 = vmatprep.subr.mxu0 %v2181_v16 }
 0x1d3   :  { %v435_v52 = vpop.f32.mrb[4].mxu1 }
 0x1d4   :  { %v1947_v53 = vpop.f32.mrb[5].mxu1  ;;  %v958_v54 = vsel %vm957_vm3, %v435_v52, -inf }
 0x1d5   :  { %959 = vmax.xlane.f32.xlu0 %v958_v54 }
 0x247   :  { %v509_v55 = vpop.f32.mrb[6].mxu1 }
 0x248   :  { %v1952_v56 = vpop.f32.mrb[7].mxu1  ;;  %v583_v57 = vpop.f32.mrb[2].mxu0  ;;  %v961_v58 = vsel %vm957_vm3, %v509_v55, -inf }
 0x249   :  { %v1957_v59 = vpop.f32.mrb[3].mxu0  ;;  %962 = vmax.xlane.f32.xlu1 %v961_v58  ;;  %v964_v60 = vsel %vm957_vm3, %v583_v57, -inf }
 0x24a   :  { %965 = vmax.xlane.f32.xlu0 %v964_v60 }
 0x24b   :  { %v657_v61 = vpop.f32.mrb[8].mxu1 }
 0x24c   :  { %v1962_v62 = vpop.f32.mrb[9].mxu1  ;;  %v731_v63 = vpop.f32.mrb[4].mxu0  ;;  %v967_v0 = vsel %vm957_vm3, %v657_v61, -inf }
 0x24d   :  { %v1967_v1 = vpop.f32.mrb[5].mxu0  ;;  %v970_v2 = vsel %vm957_vm3, %v731_v63, -inf }
 0x24e   :  { %971 = vmax.xlane.f32.xlu1 %v970_v2  ;;  %968 = vmax.xlane.f32.xlu0 %v967_v0 }
 0x24f   :  { %v805_v3 = vpop.f32.mrb[10].mxu1 }
 0x250   :  { %v1972_v4 = vpop.f32.mrb[11].mxu1  ;;  %v973_v6 = vsel %vm957_vm3, %v805_v3, -inf }
 0x252   :  { %974 = vmax.xlane.f32.xlu0 %v973_v6 }
 0x253   :  { %v953_v7 = vpop.f32.mrb[12].mxu1 }
 0x254   :  { %v879_v8 = vpop.f32.mrb[6].mxu0  ;;  %v1982_v9 = vpop.f32.mrb[13].mxu1  ;;  %v979_v10 = vsel %vm957_vm3, %v953_v7, -inf }
 0x255   :  { %v1977_v11 = vpop.f32.mrb[7].mxu0  ;;  %v976_v13 = vsel %vm957_vm3, %v879_v8, -inf }
 0x256   :  { %977 = vmax.xlane.f32.xlu1 %v976_v13  ;;  %980 = vmax.xlane.f32.xlu0 %v979_v10 }
 0x262   :  { %v960_v14 = vpop.xlane.xlu0 %959 }
 0x263   :  { %v982_v15 = vsub.f32 %v435_v52, %v960_v14 }
 0x265   :  { %v990_v17 = vmul.f32 1.442695, %v982_v15 }
 0x267   :  { %345 = vrot.lane.b32.xlu1 %v308_v51, %s2184_s21  ;;  %2094 = vpow2.f32 %v990_v17 }
 0x26b   :  { %351 = vrot.lane.b32.xlu1 %v308_v51, %s2183_s20 }
 0x26c   :  { %348 = vrot.lane.b32.xlu0 %v308_v51, %s2185_s2 }
 0x26f   :  { %355 = vrot.lane.b32.xlu1 %v2328_v49, %s2184_s21 }
 0x271   :  { %v2095_v18 = vpop.eup %2094 }
 0x272   :  { %v1006_v19 = vsel %vm957_vm3, %v2095_v18, 0.0 }
 0x293   :  { %1007 = vadd.xlane.f32.xlu1 %v1006_v19 }
 0x2d6   :  { %v963_v20 = vpop.xlane.xlu1 %962 }
 0x2d7   :  { %v983_v21 = vsub.f32 %v509_v55, %v963_v20  ;;  %v966_v22 = vpop.xlane.xlu0 %965 }
 0x2d8   :  { %v984_v23 = vsub.f32 %v583_v57, %v966_v22 }
 0x2d9   :  { %v992_v24 = vmul.f32 1.442695, %v983_v21 }
 0x2da   :  { %v994_v25 = vmul.f32 1.442695, %v984_v23 }
 0x2db   :  { %2096 = vpow2.f32 %v992_v24  ;;  %v972_v26 = vpop.xlane.xlu1 %971  ;;  %v969_v27 = vpop.xlane.xlu0 %968  ;;  %v1661_v24 = vld [vmem:[%s2448_s4] sm:$0xff] }
 0x2dc   :  { %2098 = vpow2.f32 %v994_v25  ;;  %v986_v28 = vsub.f32 %v731_v63, %v972_v26  ;;  %v985_v29 = vsub.f32 %v657_v61, %v969_v27  ;;  %v1662_v25 = vld [vmem:[%s2448_s4 + $0x8] sm:$0xff] }
 0x2dd   :  { %v2066_v26 = vpack.c.bf16 %v1662_v25, %v1661_v24 }
 0x2de   :  { %v998_v30 = vmul.f32 1.442695, %v986_v28  ;;  %v996_v31 = vmul.f32 1.442695, %v985_v29  ;;  %v1664_v29 = vld [vmem:[%s2448_s4 + $0x18] sm:$0xff] }
 0x2df   :  { %v975_v32 = vpop.xlane.xlu0 %974 }
 0x2e0   :  { %2100 = vpow2.f32 %v998_v30  ;;  %v987_v33 = vsub.f32 %v805_v3, %v975_v32  ;;  %v1666_v32 = vld [vmem:[%s2448_s4 + $0x28] sm:$0xff] }
 0x2e1   :  { %2102 = vpow2.f32 %v996_v31  ;;  %v1665_v31 = vld [vmem:[%s2448_s4 + $0x20] sm:$0xff] }
 0x2e2   :  { %v1000_v34 = vmul.f32 1.442695, %v987_v33  ;;  %v2074_v33 = vpack.c.bf16 %v1666_v32, %v1665_v31 }
 0x2e3   :  { %v978_v35 = vpop.xlane.xlu1 %977  ;;  %v981_v36 = vpop.xlane.xlu0 %980 }
 0x2e4   :  { %2104 = vpow2.f32 %v1000_v34  ;;  %v988_v37 = vsub.f32 %v879_v8, %v978_v35  ;;  %v989_v38 = vsub.f32 %v953_v7, %v981_v36  ;;  %v1667_v34 = vld [vmem:[%s2448_s4 + $0x30] sm:$0xff]  ;;  %v1668_v35 = vld [vmem:[%s2448_s4 + $0x38] sm:$0xff] }
 0x2e5   :  { %v2097_v39 = vpop.eup %2096  ;;  %v2078_v36 = vpack.c.bf16 %v1668_v35, %v1667_v34 }
 0x2e6   :  { %v2099_v40 = vpop.eup %2098  ;;  %v1002_v41 = vmul.f32 1.442695, %v988_v37  ;;  %v1004_v42 = vmul.f32 1.442695, %v989_v38  ;;  %v1009_v43 = vsel %vm957_vm3, %v2097_v39, 0.0 }
 0x2e7   :  { %v346_v44 = vpop.permute.xlu1 %345  ;;  %1010 = vadd.xlane.f32.xlu0 %v1009_v43  ;;  %v1012_v45 = vsel %vm957_vm3, %v2099_v40, 0.0  ;;  %v349_v62 = vpop.permute.xlu0 %348 }
 0x2e8   :  { %2106 = vpow2.f32 %v1002_v41  ;;  %1013 = vadd.xlane.f32.xlu1 %v1012_v45  ;;  %1989 = vmatpush3.msra.mxu1 %v346_v44 }
 0x2e9   :  { %2108 = vpow2.f32 %v1004_v42  ;;  %1998 = vmatprep.subr.mxu1 %v2181_v16 }
 0x2ea   :  { %v2101_v46 = vpop.eup %2100 }
 0x2eb   :  { %v2103_v47 = vpop.eup %2102  ;;  %v1018_v48 = vsel %vm957_vm3, %v2101_v46, 0.0  ;;  %v352_v57 = vpop.permute.xlu1 %351 }
 0x2ec   :  { %1019 = vadd.xlane.f32.xlu1 %v1018_v48  ;;  %v1015_v50 = vsel %vm957_vm3, %v2103_v47, 0.0 }
 0x2ed   :  { %1016 = vadd.xlane.f32.xlu0 %v1015_v50 }
 0x2ee   :  { %v2105_v51 = vpop.eup %2104 }
 0x2ef   :  { %v1021_v52 = vsel %vm957_vm3, %v2105_v51, 0.0  ;;  %v356_v58 = vpop.permute.xlu1 %355 }
 0x2f1   :  { %1022 = vadd.xlane.f32.xlu0 %v1021_v52 }
 0x2f2   :  { %v2351_v53 = vpop.eup %2106 }
 0x2f3   :  { %v2353_v54 = vpop.eup %2108  ;;  %v1024_v55 = vsel %vm957_vm3, %v2351_v53, 0.0 }
 0x2f4   :  { %1025 = vadd.xlane.f32.xlu1 %v1024_v55  ;;  %v1027_v56 = vsel %vm957_vm3, %v2353_v54, 0.0 }
 0x2f5   :  { %1028 = vadd.xlane.f32.xlu0 %v1027_v56 }
 0x305   :  { %361 = vrot.lane.b32.xlu1 %v2328_v49, %s2183_s20 }
 0x30b   :  { %358 = vrot.lane.b32.xlu0 %v2328_v49, %s2185_s2 }
 0x320   :  { %v1008_v59 = vpop.xlane.xlu1 %1007 }
 0x321   :  { %2110 = vrcp.f32 %v1008_v59 }
 0x32b   :  { %v2111_v60 = vpop.eup %2110 }
 0x32c   :  { %v1031_v61 = vmul.f32 %v2111_v60, %v2095_v18 }
 0x32e   :  { %1986 = vmatmul.mubr.msk.f32.vlgmr.msra.gmra.mrb[8].mxu0 %vm957_vm3, %v1031_v61 }
 0x32f   :  { %1994 = vmatpush3.msra.mxu0 %v349_v62  ;;  %1995 = vmatprep.mubr.msk.f32.mxu0 %vm2182_vm1, %v2181_v16 }
 0x330   :  { %2003 = vmatprep.subr.mxu0 %v2181_v16 }
 0x374   :  { %v1011_v63 = vpop.xlane.xlu0 %1010 }
 0x375   :  { %2112 = vrcp.f32 %v1011_v63  ;;  %v1014_v0 = vpop.xlane.xlu1 %1013 }
 0x376   :  { %2114 = vrcp.f32 %v1014_v0  ;;  %v1669_v0 = vlaneseq }
 0x379   :  { %v1020_v1 = vpop.xlane.xlu1 %1019 }
 0x37a   :  { %2116 = vrcp.f32 %v1020_v1  ;;  %v1017_v2 = vpop.xlane.xlu0 %1016  ;;  %v1670_v1 = vshrl.u32 %v1669_v0, 7 }
 0x37b   :  { %2118 = vrcp.f32 %v1017_v2 }
 0x37c   :  { %v1671_v2 = vsub.s32 0, %v1670_v1 }
 0x37e   :  { %v1023_v3 = vpop.xlane.xlu0 %1022 }
 0x37f   :  { %v2113_v4 = vpop.eup %2112  ;;  %2120 = vrcp.f32 %v1023_v3  ;;  %v59_v3 = vld [vmem:[%s2449_s5] sm:$0x7]  ;;  %s2189_s5 = smov [#allocation5]  }
 0x380   :  { %v2115_v6 = vpop.eup %2114  ;;  %v1033_v7 = vmul.f32 %v2113_v4, %v2097_v39  ;;  %v1672_v4 = vrot.slane %v59_v3, %v1671_v2  ;;  %s1803_s1 = sshll.u32 %s2189_s5, 4  ;;  %s1804_s1 = int_to_ptr.vmem [resolvable:$true] %s1803_s1 }
 0x381   :  { %v1035_v8 = vmul.f32 %v2115_v6, %v2099_v40  ;;  %v1026_v9 = vpop.xlane.xlu1 %1025  ;;  %s2152_s18 = scalar_lea.vmem %s1804_s1, 256  ;;  %p2157_p9 = scmp.lt.s32.totalorder %s1804_s1, %s1804_s1 }
 0x382   :  { %2122 = vrcp.f32 %v1026_v9  ;;  %v1029_v10 = vpop.xlane.xlu0 %1028  ;;  %1991 = vmatmul.mubr.msk.f32.vlgmr.msra.gmra.mrb[14].mxu1 %vm957_vm3, %v1033_v7  ;;  %p2153_p8 = scmp.ne.s32.totalorder %s1804_s1, %s2152_s18  ;;  %p2158_p10 = scmp.lt.s32.totalorder %s2152_s18, %s2152_s18 }
 0x383   :  { %2124 = vrcp.f32 %v1029_v10  ;;  %1999 = vmatpush3.msra.mxu1 %v352_v57  ;;  %1996 = vmatmul.mubr.msk.f32.vlgmr.msra.gmra.mrb[10].mxu0 %vm957_vm3, %v1035_v8 }
 0x384   :  { %v2117_v11 = vpop.eup %2116  ;;  %2004 = vmatpush3.msra.mxu0 %v2328_v49  ;;  %2000 = vmatprep.mubr.msk.f32.mxu1 %vm2182_vm1, %v2181_v16  ;;  %p2159_p11 = por %p2158_p10, %p2157_p9 }
 0x385   :  { %v2119_v13 = vpop.eup %2118  ;;  %v1039_v14 = vmul.f32 %v2117_v11, %v2101_v46  ;;  %2005 = vmatprep.mubr.msk.f32.mxu0 %vm2182_vm1, %v2181_v16  ;;  %2008 = vmatprep.subr.mxu1 %v2181_v16  ;;  %v362_v20 = vpop.permute.xlu1 %361 }
 0x386   :  { %v1037_v15 = vmul.f32 %v2119_v13, %v2103_v47  ;;  %v359_v17 = vpop.permute.xlu0 %358  ;;  %2013 = vmatprep.subr.mxu0 %v2181_v16  ;;  %p2160_p12 = pnand %p2159_p11, %p2153_p8 }
 0x387   :  { %2006 = vmatmul.mubr.msk.f32.vlgmr.msra.gmra.mrb[12].mxu0 %vm957_vm3, %v1039_v14 }
 0x388   :  { %2001 = vmatmul.mubr.msk.f32.vlgmr.msra.gmra.mrb[16].mxu1 %vm957_vm3, %v1037_v15  ;;  %2014 = vmatpush3.msra.mxu0 %v359_v17 }
 0x389   :  { %v2121_v49 = vpop.eup %2120  ;;  %2009 = vmatpush3.msra.mxu1 %v356_v58  ;;  %2010 = vmatprep.mubr.msk.f32.mxu1 %vm2182_vm1, %v2181_v16 }
 0x38a   :  { %v1041_v18 = vmul.f32 %v2121_v49, %v2105_v51  ;;  %2018 = vmatprep.subr.mxu1 %v2181_v16  ;;  %2015 = vmatprep.mubr.msk.f32.mxu0 %vm2182_vm1, %v2181_v16 }
 0x38b   :  { %2067 = vmatprep.subr.bf16.mxu0 %v2066_v26 }
 0x38c   :  { %v2123_v19 = vpop.eup %2122  ;;  %2011 = vmatmul.mubr.msk.f32.vlgmr.msra.gmra.mrb[18].mxu1 %vm957_vm3, %v1041_v18 }
 0x38d   :  { %v2125_v21 = vpop.eup %2124  ;;  %v1043_v22 = vmul.f32 %v2123_v19, %v2351_v53  ;;  %2019 = vmatpush3.msra.mxu1 %v362_v20  ;;  %2020 = vmatprep.mubr.msk.f32.mxu1 %vm2182_vm1, %v2181_v16  ;;  %v1663_v16 = vld [vmem:[%s2448_s4 + $0x10] sm:$0xff] }
 0x38e   :  { %v1045_v23 = vmul.f32 %v2125_v21, %v2353_v54  ;;  %v2070_v30 = vpack.c.bf16 %v1664_v29, %v1663_v16  ;;  %v1786_v16 = vsub.s32 1, %v1670_v1  ;;  %v1792_v29 = vsub.s32 2, %v1670_v1 }
 0x38f   :  { %2016 = vmatmul.mubr.msk.f32.vlgmr.msra.gmra.mrb[14].mxu0 %vm957_vm3, %v1043_v22 }
 0x390   :  { %2021 = vmatmul.mubr.msk.f32.vlgmr.msra.gmra.mrb[20].mxu1 %vm957_vm3, %v1045_v23  ;;  %2069 = vmatpush3.bf16.msra.mxu0 %v2066_v26  ;;  %v1793_v32 = vrot.slane %v59_v3, %v1792_v29 }
 0x391   :  { %2071 = vmatprep.subr.bf16.mxu0 %v2070_v30 }
 0x394   :  { %2073 = vmatpush3.bf16.msra.mxu0 %v2070_v30  ;;  %v1787_v30 = vrot.slane %v59_v3, %v1786_v16 }
 0x395   :  { %2075 = vmatprep.subr.bf16.mxu0 %v2074_v33 }
 0x398   :  { %2077 = vmatpush3.bf16.msra.mxu0 %v2074_v33 }
 0x399   :  { %2079 = vmatprep.subr.bf16.mxu0 %v2078_v36 }
 0x39c   :  { %2081 = vmatpush3.bf16.msra.mxu0 %v2078_v36 }
 0x401   :  { %v1115_v27 = vpop.f32.mrb[8].mxu0 }
 0x402   :  { %v1987_v28 = vpop.f32.mrb[9].mxu0 }
 0x455   :  { %v1188_v37 = vpop.f32.mrb[14].mxu1 }
 0x456   :  { %v1261_v38 = vpop.f32.mrb[10].mxu0  ;;  %1631 = vrot.lane.b32.xlu0 %v1188_v37, %s2186_s15  ;;  %v1992_v39 = vpop.f32.mrb[15].mxu1 }
 0x457   :  { %1635 = vrot.lane.b32.xlu1 %v1261_v38, %s2187_s16  ;;  %v1997_v40 = vpop.f32.mrb[11].mxu0 }
 0x45a   :  { %v1407_v41 = vpop.f32.mrb[12].mxu0 }
 0x45b   :  { %v1334_v42 = vpop.f32.mrb[16].mxu1  ;;  %v2007_v43 = vpop.f32.mrb[13].mxu0 }
 0x45c   :  { %1639 = vrot.lane.b32.xlu1 %v1334_v42, %s2188_s17  ;;  %v2002_v44 = vpop.f32.mrb[17].mxu1 }
 0x45f   :  { %v1480_v45 = vpop.f32.mrb[18].mxu1 }
 0x460   :  { %1647 = vrot.lane.b32.xlu0 %v1480_v45, %s2186_s15  ;;  %v2012_v46 = vpop.f32.mrb[19].mxu1 }
 0x462   :  { %v1553_v47 = vpop.f32.mrb[14].mxu0 }
 0x463   :  { %v1626_v48 = vpop.f32.mrb[20].mxu1  ;;  %v2017_v50 = vpop.f32.mrb[15].mxu0 }
 0x464   :  { %1651 = vrot.lane.b32.xlu0 %v1553_v47, %s2187_s16  ;;  %1655 = vrot.lane.b32.xlu1 %v1626_v48, %s2188_s17  ;;  %v2022_v51 = vpop.f32.mrb[21].mxu1 }
 0x4c8   :  { %v1632_v52 = vpop.permute.xlu0 %1631 }
 0x4c9   :  { %v1636_v53 = vpop.permute.xlu1 %1635  ;;  %v1642_v54 = vsel %vm364_vm2, %v1115_v27, %v1632_v52 }
 0x4ca   :  { %v1643_v55 = vsel %vm64_vm0, %v1642_v54, %v1636_v53 }
 0x4ce   :  { %v1640_v56 = vpop.permute.xlu1 %1639 }
 0x4cf   :  { %v1645_v57 = vsel %vm1644_vm4, %v1643_v55, %v1640_v56 }
 0x4d0   :  { %2039 = vmatprep.mubr.msk.f32.mxu0 %vm1673_vm5, %v1645_v57 }
 0x4d2   :  { %v1648_v58 = vpop.permute.xlu0 %1647 }
 0x4d3   :  { %v1658_v59 = vsel %vm364_vm2, %v1407_v41, %v1648_v58 }
 0x4d6   :  { %v1652_v60 = vpop.permute.xlu0 %1651  ;;  %v1656_v61 = vpop.permute.xlu1 %1655 }
 0x4d7   :  { %v1659_v62 = vsel %vm64_vm0, %v1658_v59, %v1652_v60 }
 0x4d8   :  { %v1660_v63 = vsel %vm1644_vm4, %v1659_v62, %v1656_v61 }
 0x4d9   :  { %2040 = vmatmul.mubr.msk.f32.vlgmr.msra.gmra.mrb[16].mxu0 %vm1673_vm5, %v1660_v63 }
 0x5ac   :  { %v2041_v6 = vpop.f32.mrb[16].mxu0 }
 0x5ad   :  { %v1752_v7 = vadd.f32 %v2041_v6, %v1672_v4  ;;  %v1746_v8 = vpop.f32.mrb[17].mxu0 }
 0x5ae   :  { %v1747_v9 = vadd.f32 %v1746_v8, %v1672_v4 }
 0x5af   :  { %v1756_v10 = vadd.f32 %v1752_v7, %v2250_v12 }
 0x5b0   :  { %v1755_v11 = vadd.f32 %v1747_v9, %v2243_v5 }
 0x5b1   :  { %v1760_v13 = vsel %vm64_vm0, %v1756_v10, 0.0 }
 0x5b2   :  { %1761 = vadd.xlane.f32.xlu1 %v1760_v13  ;;  %v1757_v14 = vsel %vm64_vm0, %v1755_v11, 0.0 }
 0x5b3   :  { %1758 = vadd.xlane.f32.xlu0 %v1757_v14 }
 0x63f   :  { %v1762_v15 = vpop.xlane.xlu1 %1761 }
 0x640   :  { %v1765_v17 = vmul.f32 0.03125, %v1762_v15  ;;  %v1759_v49 = vpop.xlane.xlu0 %1758 }
 0x641   :  { %v1764_v18 = vmul.f32 0.03125, %v1759_v49 }
 0x642   :  { %v1767_v19 = vsub.f32 %v1756_v10, %v1765_v17 }
 0x643   :  { %v1766_v20 = vsub.f32 %v1755_v11, %v1764_v18 }
 0x644   :  { %v1769_v23 = vmul.f32 %v1767_v19, %v1767_v19 }
 0x645   :  { %v1768_v21 = vmul.f32 %v1766_v20, %v1766_v20 }
 0x646   :  { %v1773_v12 = vsel %vm64_vm0, %v1769_v23, 0.0 }
 0x647   :  { %v1770_v22 = vsel %vm64_vm0, %v1768_v21, 0.0 }
 0x648   :  { %1771 = vadd.xlane.f32.xlu0 %v1770_v22 }
 0x64c   :  { %1774 = vadd.xlane.f32.xlu0 %v1773_v12 }
 0x6d5   :  { %v1772_v5 = vpop.xlane.xlu0 %1771 }
 0x6d6   :  { %v1776_v24 = vmul.f32 0.03125, %v1772_v5 }
 0x6d8   :  { %v1778_v25 = vadd.f32 1e-05, %v1776_v24 }
 0x6d9   :  { %v1775_v26 = vpop.xlane.xlu0 %1774 }
 0x6da   :  { %2126 = vrsqrt.f32 %v1778_v25  ;;  %v1777_v27 = vmul.f32 0.03125, %v1775_v26 }
 0x6dc   :  { %v1779_v28 = vadd.f32 1e-05, %v1777_v27 }
 0x6de   :  { %2128 = vrsqrt.f32 %v1779_v28 }
 0x6e4   :  { %v2127_v31 = vpop.eup %2126 }
 0x6e5   :  { %v1782_v33 = vmul.f32 %v2127_v31, %v1766_v20 }
 0x6e7   :  { %v1788_v34 = vmul.f32 %v1787_v30, %v1782_v33 }
 0x6e8   :  { %v2129_v35 = vpop.eup %2128 }
 0x6e9   :  { %v1783_v36 = vmul.f32 %v2129_v35, %v1767_v19  ;;  %v1794_v37 = vadd.f32 %v1793_v32, %v1788_v34 }
 0x6eb   :  { %v1789_v38 = vmul.f32 %v1787_v30, %v1783_v36  ;;  %1796 = vst.msk [vmem:[#allocation5] sm:$0xff] %vm64_vm0, %v1794_v37 }
 0x6ed   :  { %v1795_v39 = vadd.f32 %v1793_v32, %v1789_v38 }
 0x6ef   :  { %1797 = vst.msk [vmem:[#allocation5 + $0x8] sm:$0xff] %vm64_vm0, %v1795_v39 }
 0x6f0   :  { %2163 = shalt.err (!%p2160_p12)
}
 0x6f1   :  { %s2164_s21 = scalar_lea.hbm %s2450_s6, 256 }
 0x6f2   :  { %p2165_p13 = scmp.ne.s32.totalorder %s2450_s6, %s2164_s21  ;;  %p2168_p0 = scmp.lt.u32.totalorder %s2164_s21, %s2450_s6 }
 0x6f4   :  { %p2170_p1 = pnand %p2168_p0, %p2165_p13 }
 0x6f6   :  { %2173 = shalt.err (!%p2170_p1)
}
 0x6f7   :  { %1809 = dma.vmem_to_hbm [thread:$0]  %s1804_s1, 256, %s2450_s6, [#allocation4], %s2179_s7, %s2179_s7, %s2180_s8  }
 0x6f8   :  { %2176 = dma.done.wait [#allocation4], 256  }
 0x6f9   :  { %2177 = vsyncadd [#allocation4], 4294967040 }
 0x6fa   :  { %1813 = vsyncpa [#allocation3], 1 }
 0x6fb   :  { %1814 = vsyncpa [#allocation4], 1 }

</bundles_post_ra>
